<compile_context>
chip_gen: v7x
topology: tpu7x:2x2x1
jax: 0.10.0
libtpu: 0.0.40
codegen_flags: <defaults>
</compile_context>

<pallas_src>
import functools

import jax
import jax.numpy as jnp
from jax.experimental import pallas as pl
from jax.experimental.pallas import tpu as pltpu


def _ge2e_kernel(wb_ref, e_ref, out_ref, *, N, M, mm_dtype, assume_normalized):
    NM = N * M
    e_in = e_ref[...]                                   # (NM, D), f32 or bf16
    D = e_in.shape[-1]
    ef32 = e_in.astype(jnp.float32)                     # no-op when already f32
    e_mm = e_in if e_in.dtype == mm_dtype else ef32.astype(mm_dtype)

    # own[j, r] == True iff utterance (column) r belongs to speaker (row) j.
    # Broadcast-shaped iotas + range compare: no (N, NM) int temporaries, no `//`.
    col = jax.lax.broadcasted_iota(jnp.int32, (1, NM), 1)          # (1, NM)
    row_lo = jax.lax.broadcasted_iota(jnp.int32, (N, 1), 0) * M    # (N, 1)
    own = (col >= row_lo) & (col < row_lo + M)                     # (N, NM) bool

    # Per-speaker sums s[j] = sum_i e[j*M + i] via a tiny one-hot matmul.  This
    # keeps the kernel free of sublane-merging reshapes so e can stay unpadded.
    agg = jnp.where(own, 1.0, 0.0).astype(mm_dtype)                # (N, NM)
    s = jax.lax.dot_general(agg, e_mm, (((1,), (0,)), ((), ())),
                            preferred_element_type=jnp.float32)    # (N, D) f32

    # One matmul for all similarities, transposed / lane-dense:
    #   simT[j, r] = dot(s[j], e[r]);   e @ c.T == simT.T / M
    # (Contracts the trailing dim of both operands; at realistic NM*D, inspect the
    #  lowering for an XLU relayout of e — at these sizes it is noise.)
    s_mm = s.astype(mm_dtype)                                      # no-op for f32
    simT = jax.lax.dot_general(s_mm, e_mm, (((1,), (1,)), ((), ())),
                               preferred_element_type=jnp.float32)  # (N, NM) f32

    # Exclusive-centroid value for the own-speaker entry:
    #   excl[r] = dot((s[spk(r)] - e[r]) / (M-1), e[r])
    #           = (dot(s[spk(r)], e[r]) - ||e[r]||^2) / (M-1)
    diag_s = jnp.sum(jnp.where(own, simT, 0.0), axis=0, keepdims=True)   # (1, NM)
    if assume_normalized:
        rownorm2 = jnp.float32(1.0)                     # embeddings are unit-norm
    else:
        # ||e[r]||^2 laid out along lanes via a ones-row matmul (f32, exact).
        ones_row = jnp.ones((1, D), jnp.float32)
        rownorm2 = jax.lax.dot_general(ones_row, ef32 * ef32,
                                       (((1,), (1,)), ((), ())),
                                       preferred_element_type=jnp.float32)  # (1, NM)
    excl = (diag_s - rownorm2) * jnp.float32(1.0 / (M - 1))                 # (1, NM)

    sim = jnp.where(own, excl, simT * jnp.float32(1.0 / M))                 # (N, NM)

    # Affine transform with the learned scalars (SMEM).
    w = wb_ref[0]
    b = wb_ref[1]
    logits = w * sim + b                                                    # (N, NM)

    # Cross-entropy with target = own speaker; the softmax over speakers is a
    # sublane (axis 0) reduce in this layout.  The correct-class logit is simply
    # w*excl + b — no need to re-extract it from `logits`.
    col_max = jnp.max(logits, axis=0, keepdims=True)                        # (1, NM)
    lse = jnp.log(jnp.sum(jnp.exp(logits - col_max), axis=0, keepdims=True)) + col_max
    correct = w * excl + b                                                  # (1, NM)
    out_ref[0] = jnp.sum(lse - correct) * jnp.float32(1.0 / NM)


@functools.partial(jax.jit, static_argnums=(3, 4),
                   static_argnames=("matmul_dtype", "assume_normalized"))
def ge2e_loss(e, w, b, N, M, *, matmul_dtype=jnp.float32, assume_normalized=False):
    """GE2E loss (forward only).

    e: (N, M, D) or (N*M, D) float embeddings (f32 or bf16 accepted as-is).
    The PyTorch module assumes they are already L2-normalized along D; pass
    assume_normalized=True in that case to skip the exact ||e||^2 pass.  With
    non-unit embeddings that flag would silently change the result, so it stays
    off by default (exact module semantics for any input).
    Returns a scalar float32 loss.
    """
    if M < 2:
        raise ValueError("GE2E loss requires M >= 2 utterances per speaker.")
    e = jnp.asarray(e)
    if e.dtype not in (jnp.float32, jnp.bfloat16):
        e = e.astype(jnp.float32)
    e = e.reshape(N * M, -1)        # metadata-only under jit (no extra HBM pass)
    D = e.shape[-1]
    NM = N * M
    wb = jnp.stack([jnp.asarray(w, jnp.float32).reshape(()),
                    jnp.asarray(b, jnp.float32).reshape(())])      # (2,) SMEM operand

    kernel = functools.partial(_ge2e_kernel, N=N, M=M,
                               mm_dtype=matmul_dtype,
                               assume_normalized=assume_normalized)

    # Advisory scheduling hint for XLA.
    cost = pl.CostEstimate(
        flops=4 * N * NM * D + (0 if assume_normalized else 2 * NM * D) + 16 * N * NM,
        transcendentals=(N + 1) * NM,
        bytes_accessed=NM * D * e.dtype.itemsize + 3 * 4)

    # Whole problem is VMEM-resident (no grid).  Budget generously but stay well
    # under the ~32 MiB scoped limit so the same kernel is safe on v5e/v6e and on
    # v7x (64 MiB physical per TensorCore, not 128 MiB).
    vmem_needed = (NM * D * 12          # input + f32 copy + optional matmul copy
                   + N * D * 8          # per-speaker sums (+ cast)
                   + 10 * N * NM * 4    # (N, NM) mask / similarity intermediates
                   + (2 << 20))         # compiler scratch headroom
    params = pltpu.CompilerParams(
        vmem_limit_bytes=int(min(max(vmem_needed, 4 << 20), 32 << 20)))

    out = pl.pallas_call(
        kernel,
        out_shape=jax.ShapeDtypeStruct((1,), jnp.float32),
        in_specs=[
            pl.BlockSpec(memory_space=pltpu.MemorySpace.SMEM),   # (2,) [w, b]
            pl.BlockSpec(memory_space=pltpu.MemorySpace.VMEM),   # (NM, D) embeddings
        ],
        out_specs=pl.BlockSpec(memory_space=pltpu.MemorySpace.SMEM),
        compiler_params=params,
        cost_estimate=cost,
    )(wb, e)
    # TODO(synk): no custom VJP is defined — this kernel is forward-only; training
    # gradients need an explicit backward kernel or jax.custom_vjp.
    # TODO(synk): for very large N*M, tile the utterance/column axis with a grid
    # marked "parallel" (engages both v7x TensorCores) emitting per-tile partial
    # losses summed in the wrapper; at typical GE2E sizes the kernel is launch-bound.
    return out[0]


def _ge2e_loss_ref(e, w, b, N, M):
    """Pure-JAX reference mirroring the PyTorch module."""
    D = e.shape[-1]
    c = jnp.mean(e, axis=1)                        # (N, D)
    s = jnp.sum(e, axis=1)                         # (N, D)
    ef = e.reshape(N * M, D)
    sim = ef @ c.T                                 # (NM, N)
    rows = jnp.arange(N * M)
    spk = rows // M
    cj = (s[spk] - ef) / (M - 1)
    diag = jnp.sum(cj * ef, axis=-1)
    sim = sim.at[rows, spk].set(diag)
    logits = w * sim + b
    lse = jax.nn.logsumexp(logits, axis=-1)
    return jnp.mean(lse - logits[rows, spk])


if __name__ == "__main__":
    N, M, D = 4, 8, 32  # speakers, utterances per speaker, embedding dim
    key = jax.random.PRNGKey(0)
    e = jax.random.normal(key, (N, M, D), dtype=jnp.float32)
    e = e / jnp.linalg.norm(e, axis=-1, keepdims=True)  # L2 norm, as the module expects

    # Deterministic parameters matching nn.Parameter init in __init__.
    w = jnp.float32(10.0)
    b = jnp.float32(-5.0)

    ref = _ge2e_loss_ref(e, w, b, N, M)

    # Default path: f32 matmul operands, exact ||e||^2 (module semantics for any input).
    loss = jax.block_until_ready(ge2e_loss(e, w, b, N, M))
    assert jnp.allclose(loss, ref, atol=1e-3, rtol=1e-3), (loss, ref)

    # Fast path for unit-norm embeddings (skips the e*e pass + ones-row matmul).
    loss_n = jax.block_until_ready(ge2e_loss(e, w, b, N, M, assume_normalized=True))
    assert jnp.allclose(loss_n, ref, atol=1e-3, rtol=1e-3), (loss_n, ref)

    # Opt-in bf16 matmul operands (only worthwhile at very large N*M*D).
    loss_bf16 = jax.block_until_ready(
        ge2e_loss(e, w, b, N, M, matmul_dtype=jnp.bfloat16))
    assert jnp.allclose(loss_bf16, ref, atol=6e-2, rtol=6e-2), (loss_bf16, ref)

    print("KERNEL_OK")
</pallas_src>

<mosaic_0001>
module attributes {stable_mosaic.version = 11 : i64} {
  func.func @_ge2e_kernel(%arg0: memref<2xf32, #tpu.memory_space<smem>>, %arg1: memref<32x32xf32, #tpu.memory_space<vmem>>, %arg2: memref<1xf32, #tpu.memory_space<smem>>) attributes {dimension_semantics = [], scalar_prefetch = 0 : i64, scratch_operands = 0 : i64, tpu.core_type = #tpu.core_type<tc>} {
    %c0 = arith.constant 0 : index
    %c0_0 = arith.constant 0 : index
    %0 = vector.load %arg1[%c0, %c0_0] : memref<32x32xf32, #tpu.memory_space<vmem>>, vector<32x32xf32>
    %1 = tpu.iota {dimensions = array<i32: 1>} : vector<1x32xi32>
    %2 = tpu.iota {dimensions = array<i32: 0>} : vector<4x1xi32>
    %c8_i32 = arith.constant 8 : i32
    %3 = vector.broadcast %c8_i32 : i32 to vector<4x1xi32>
    %4 = arith.muli %2, %3 : vector<4x1xi32>
    %5 = vector.broadcast %1 : vector<1x32xi32> to vector<4x32xi32>
    %6 = vector.broadcast %4 : vector<4x1xi32> to vector<4x32xi32>
    %7 = arith.cmpi sge, %5, %6 : vector<4x32xi32>
    %c8_i32_1 = arith.constant 8 : i32
    %8 = vector.broadcast %c8_i32_1 : i32 to vector<4x1xi32>
    %9 = arith.addi %4, %8 : vector<4x1xi32>
    %10 = vector.broadcast %1 : vector<1x32xi32> to vector<4x32xi32>
    %11 = vector.broadcast %9 : vector<4x1xi32> to vector<4x32xi32>
    %12 = arith.cmpi slt, %10, %11 : vector<4x32xi32>
    %13 = arith.andi %7, %12 : vector<4x32xi1>
    %cst = arith.constant 1.000000e+00 : f32
    %cst_2 = arith.constant 0.000000e+00 : f32
    %14 = vector.broadcast %cst : f32 to vector<4x32xf32>
    %15 = vector.broadcast %cst_2 : f32 to vector<4x32xf32>
    %16 = arith.select %13, %14, %15 : vector<4x32xi1>, vector<4x32xf32>
    %cst_3 = arith.constant dense<0.000000e+00> : vector<4x32xf32>
    %17 = tpu.matmul %16, %0, %cst_3 {dimension_numbers = #tpu.dot_dimension_numbers<[1], [0], [0], [1], [0, 0, 1, 1], [], []>} : vector<4x32xf32>, vector<32x32xf32>, vector<4x32xf32> -> vector<4x32xf32>
    %cst_4 = arith.constant dense<0.000000e+00> : vector<4x32xf32>
    %18 = tpu.matmul %17, %0, %cst_4 {dimension_numbers = #tpu.dot_dimension_numbers<[1], [1], [0], [0], [0, 0, 1, 0], [], []>} : vector<4x32xf32>, vector<32x32xf32>, vector<4x32xf32> -> vector<4x32xf32>
    %cst_5 = arith.constant 0.000000e+00 : f32
    %19 = vector.broadcast %cst_5 : f32 to vector<4x32xf32>
    %20 = arith.select %13, %18, %19 : vector<4x32xi1>, vector<4x32xf32>
    %cst_6 = arith.constant dense<0.000000e+00> : vector<32xf32>
    %21 = vector.multi_reduction <add>, %20, %cst_6 [0] : vector<4x32xf32> to vector<32xf32>
    %22 = vector.shape_cast %21 : vector<32xf32> to vector<1x32xf32>
    %cst_7 = arith.constant 1.000000e+00 : f32
    %23 = vector.broadcast %cst_7 : f32 to vector<1x32xf32>
    %24 = arith.mulf %0, %0 : vector<32x32xf32>
    %cst_8 = arith.constant dense<0.000000e+00> : vector<1x32xf32>
    %25 = tpu.matmul %23, %24, %cst_8 {dimension_numbers = #tpu.dot_dimension_numbers<[1], [1], [0], [0], [0, 0, 1, 0], [], []>} : vector<1x32xf32>, vector<32x32xf32>, vector<1x32xf32> -> vector<1x32xf32>
    %26 = arith.subf %22, %25 : vector<1x32xf32>
    %cst_9 = arith.constant 0.142857149 : f32
    %27 = vector.broadcast %cst_9 : f32 to vector<1x32xf32>
    %28 = arith.mulf %26, %27 : vector<1x32xf32>
    %cst_10 = arith.constant 1.250000e-01 : f32
    %29 = vector.broadcast %cst_10 : f32 to vector<4x32xf32>
    %30 = arith.mulf %18, %29 : vector<4x32xf32>
    %31 = vector.shape_cast %28 : vector<1x32xf32> to vector<1x32xf32>
    %32 = vector.broadcast %31 : vector<1x32xf32> to vector<4x32xf32>
    %33 = arith.select %13, %32, %30 : vector<4x32xi1>, vector<4x32xf32>
    %c0_11 = arith.constant 0 : index
    %34 = memref.load %arg0[%c0_11] : memref<2xf32, #tpu.memory_space<smem>>
    %c1 = arith.constant 1 : index
    %35 = memref.load %arg0[%c1] : memref<2xf32, #tpu.memory_space<smem>>
    %36 = vector.broadcast %34 : f32 to vector<4x32xf32>
    %37 = arith.mulf %36, %33 : vector<4x32xf32>
    %38 = vector.broadcast %35 : f32 to vector<4x32xf32>
    %39 = arith.addf %37, %38 : vector<4x32xf32>
    %cst_12 = arith.constant dense<0xFF800000> : vector<32xf32>
    %40 = vector.multi_reduction <maximumf>, %39, %cst_12 [0] : vector<4x32xf32> to vector<32xf32>
    %41 = vector.shape_cast %40 : vector<32xf32> to vector<1x32xf32>
    %42 = vector.broadcast %41 : vector<1x32xf32> to vector<4x32xf32>
    %43 = arith.subf %39, %42 : vector<4x32xf32>
    %44 = math.exp %43 : vector<4x32xf32>
    %cst_13 = arith.constant dense<0.000000e+00> : vector<32xf32>
    %45 = vector.multi_reduction <add>, %44, %cst_13 [0] : vector<4x32xf32> to vector<32xf32>
    %46 = vector.shape_cast %45 : vector<32xf32> to vector<1x32xf32>
    %47 = math.log %46 : vector<1x32xf32>
    %48 = arith.addf %47, %41 : vector<1x32xf32>
    %49 = vector.broadcast %34 : f32 to vector<1x32xf32>
    %50 = arith.mulf %49, %28 : vector<1x32xf32>
    %51 = vector.broadcast %35 : f32 to vector<1x32xf32>
    %52 = arith.addf %50, %51 : vector<1x32xf32>
    %53 = arith.subf %48, %52 : vector<1x32xf32>
    %54 = vector.shape_cast %53 : vector<1x32xf32> to vector<1x1x32xf32>
    %cst_14 = arith.constant dense<0.000000e+00> : vector<1xf32>
    %55 = vector.multi_reduction <add>, %54, %cst_14 [1, 2] : vector<1x1x32xf32> to vector<1xf32>
    %56 = vector.shape_cast %55 : vector<1xf32> to vector<1x1x1xf32>
    %57 = vector.extract %56[0, 0, 0] : f32 from vector<1x1x1xf32>
    %cst_15 = arith.constant 3.125000e-02 : f32
    %58 = arith.mulf %57, %cst_15 : f32
    %c0_16 = arith.constant 0 : index
    %59 = memref.load %arg2[%c0_16] : memref<1xf32, #tpu.memory_space<smem>>
    memref.store %58, %arg2[%c0_16] : memref<1xf32, #tpu.memory_space<smem>>
    return
  }
}

</mosaic_0001>

<bundles_post_ra>
// kernel: ge2e_loss.1
= control target key start
LH: loop header
LB: loop body
LE: loop exit
PB: predicated region body
PF: predicated region fallthrough
CT: control target
= control target key end

     0   :  { %7 = vsyncpa [#allocation5], 0  ;;  %s613_s0 = inlined_call_operand.vmem [shape: f32[2], index: 0, kind: input, shape index: {}]   ;;  %s614_s1 = inlined_call_operand.hbm [shape: f32[32,32], index: 1, kind: input, shape index: {}]   ;;  %s615_s2 = inlined_call_operand.hbm [shape: f32[1], index: 2, kind: output, shape index: {}]  }
   0x1   :  { %8 = vsyncpa [#allocation3], 0 }
   0x2   :  { %9 = vsyncpa [#allocation4], 0  ;;  %s16_s11 = sshll.u32 %s613_s0, 4  ;;  %s17_s11 = int_to_ptr.vmem [resolvable:$true] %s16_s11 }
   0x3   :  { %s473_s12 = scalar_lea.vmem %s17_s11, 16  ;;  %p478_p1 = scmp.lt.s32.totalorder %s17_s11, %s17_s11 }
   0x4   :  { %p474_p0 = scmp.ne.s32.totalorder %s17_s11, %s473_s12  ;;  %p479_p2 = scmp.lt.s32.totalorder %s473_s12, %s473_s12 }
   0x6   :  { %p480_p3 = por %p479_p2, %p478_p1 }
   0x8   :  { %p481_p4 = pnand %p480_p3, %p474_p0 }
   0xa   :  { %484 = shalt.err (!%p481_p4)
}
   0xb   :  { %s523_s13 = smov [#allocation2]   ;;  %s524_s14 = smov [#allocation6]  }
   0xc   :  { %19 = dma.vmem_to_smem %s17_s11, 16, %s523_s13, [#allocation5]  }
   0xd   :  { %s25_s15 = sshll.u32 %s524_s14, 4  ;;  %s485_s18 = scalar_lea.hbm %s614_s1, 512  ;;  %s26_s15 = int_to_ptr.vmem [resolvable:$true] %s25_s15 }
   0xe   :  { %p486_p5 = scmp.ne.s32.totalorder %s614_s1, %s485_s18  ;;  %p489_p6 = scmp.lt.u32.totalorder %s485_s18, %s614_s1 }
  0x10   :  { %p491_p7 = pnand %p489_p6, %p486_p5 }
  0x12   :  { %494 = shalt.err (!%p491_p7)
}
  0x13   :  { %s495_s22 = scalar_lea.vmem %s26_s15, 512  ;;  %p500_p9 = scmp.lt.s32.totalorder %s26_s15, %s26_s15 }
  0x14   :  { %p496_p8 = scmp.ne.s32.totalorder %s26_s15, %s495_s22  ;;  %p501_p10 = scmp.lt.s32.totalorder %s495_s22, %s495_s22 }
  0x16   :  { %p502_p11 = por %p501_p10, %p500_p9 }
  0x18   :  { %p503_p12 = pnand %p502_p11, %p496_p8 }
  0x1a   :  { %506 = shalt.err (!%p503_p12)
}
  0x1b   :  { %s525_s23 = smov 128   ;;  %s526_s24 = smov 8  }
  0x1c   :  { %31 = dma.hbm_to_vmem [thread:$0]  %s614_s1, 512, %s26_s15, [#allocation3], %s525_s23, %s525_s23, %s526_s24  }
  0x1d   :  { %517 = dma.done.wait [#allocation5], 16  }
  0x1e   :  { %518 = vsyncadd [#allocation5], 4294967280 }
  0x1f   :  { %519 = dma.done.wait [#allocation3], 512  }
  0x20   :  { %520 = vsyncadd [#allocation3], 4294966784 }
  0x21   :  { %38 = sfence }
  0x22   :  { %v39_v0 = vld [vmem:[#allocation6] sm:$0xff]  ;;  %v40_v1 = vld [vmem:[#allocation6 + $0x8] sm:$0xff]  ;;  %v41_v2 = vld [vmem:[#allocation6 + $0x10] sm:$0xff]  ;;  %v43_v3 = vlaneseq  ;;  %v527_v4 = vmov 0.0|0.0   ;;  %vm528_vm0 = vmmov 0   ;;  %v529_v7 = vmov 0.0  }
  0x23   :  { %436 = vmatprep.subr.bf16.mxu0 %v527_v4  ;;  %v437_v5 = vpack.c.bf16 %v40_v1, %v39_v0  ;;  %v42_v6 = vld [vmem:[#allocation6 + $0x18] sm:$0xff]  ;;  %411 = vmatprep.mubr.msk.f32.mxu0 %vm528_vm0, %v529_v7  ;;  %vm53_vm1 = vcmask 261120   ;;  %v221_v14 = vmul.f32 %v39_v0, %v39_v0  ;;  %v222_v15 = vmul.f32 %v40_v1, %v40_v1  ;;  %s591_s1 = sld [smem:[#allocation2]]  ;;  %s593_s27 = sld [smem:[#allocation2 + $0x1]] }
  0x24   :  { %v44_v8 = vand.u32 127, %v43_v3  ;;  %v46_v9 = vshrl.u32 %v43_v3, 7  ;;  %442 = vmatprep.subr.bf16.mxu1 %v527_v4  ;;  %v440_v10 = vpack.c.bf16 %v42_v6, %v41_v2  ;;  %422 = vmatprep.mubr.msk.f32.mxu1 %vm528_vm0, %v529_v7  ;;  %vm566_vm2 = vmpackc.low %vm53_vm1, %vm53_vm1  ;;  %v223_v19 = vmul.f32 %v41_v2, %v41_v2  ;;  %s507_s4 = scalar_lea.hbm %s615_s2, 16 }
  0x25   :  { %438 = vmatpush3.bf16.msra.mxu0 %v437_v5  ;;  %445 = vmatpush3.bf16.xpose.msk.msra.mxu1 %vm566_vm2, %v437_v5  ;;  %v451_v18 = vpack.c.bf16 %v222_v15, %v221_v14  ;;  %v224_v20 = vmul.f32 %v42_v6, %v42_v6  ;;  %v530_v22 = vmov 1.0   ;;  %vm213_vm6 = vcmask 257024   ;;  %p508_p13 = scmp.ne.s32.totalorder %s615_s2, %s507_s4  ;;  %p511_p0 = scmp.lt.u32.totalorder %s507_s4, %s615_s2 }
  0x26   :  { %439 = vmatprep.subr.bf16.mxu0 %v527_v4  ;;  %v47_v11 = vmul.u32 8, %v46_v9  ;;  %446 = vmatprep.subr.bf16.mxu1 %v527_v4  ;;  %v315_v38 = vsub.s32 0, %v46_v9  ;;  %vm347_vm7 = vcmask 253952  }
  0x27   :  { %v455_v21 = vpack.c.bf16 %v224_v20, %v223_v19  ;;  %p513_p1 = pnand %p511_p0, %p508_p13 }
  0x28   :  { %vm48_vm3 = vcmp.ge.s32.totalorder %v44_v8, %v47_v11  ;;  %v49_v13 = vadd.s32 8, %v47_v11 }
  0x29   :  { %441 = vmatpush3.bf16.msra.mxu0 %v440_v10  ;;  %v320_v43 = vstv %s591_s1  ;;  %v322_v45 = vstv %s593_s27 }
  0x2a   :  { %vm50_vm4 = vcmp.lt.s32.totalorder %v44_v8, %v49_v13  ;;  %450 = vmatprep.subr.bf16.mxu0 %v527_v4 }
  0x2b   :  { %vm572_vm5 = vmand %vm48_vm3, %vm50_vm4 }
  0x2c   :  { %v52_v17 = vsel %vm572_vm5, 1.0, %v529_v7 }
  0x2d   :  { %412 = vmatmul.mubr.msk.f32.vlgmr.msra.gmra.mrb[0].mxu0 %vm53_vm1, %v52_v17  ;;  %449 = vmatpush3.bf16.xpose.msk.msra.mxu1 %vm566_vm2, %v440_v10 }
  0x2e   :  { %433 = vmatprep.mubr.msk.f32.mxu0 %vm528_vm0, %v529_v7 }
  0x32   :  { %453 = vmatpush3.bf16.xpose.msk.msra.mxu0 %vm566_vm2, %v451_v18 }
  0x33   :  { %454 = vmatprep.subr.bf16.mxu0 %v527_v4 }
  0x3a   :  { %457 = vmatpush3.bf16.xpose.msk.msra.mxu0 %vm566_vm2, %v455_v21 }
  0x41   :  { %434 = vmatmul.mubr.msk.f32.vlgmr.msra.gmra.mrb[2].mxu0 %vm53_vm1, %v530_v22 }
 0x100   :  { %v123_v23 = vpop.f32.mrb[0].mxu0 }
 0x101   :  { %v413_v24 = vpop.f32.mrb[1].mxu0  ;;  %423 = vmatmul.mubr.msk.f32.vlgmr.msra.gmra.mrb[0].mxu1 %vm53_vm1, %v123_v23 }
 0x114   :  { %v306_v25 = vpop.f32.mrb[2].mxu0 }
 0x115   :  { %v435_v26 = vpop.f32.mrb[3].mxu0 }
 0x1d4   :  { %v208_v27 = vpop.f32.mrb[0].mxu1 }
 0x1d5   :  { %v212_v28 = vsel %vm572_vm5, %v208_v27, 0.0  ;;  %v424_v29 = vpop.f32.mrb[1].mxu1  ;;  %v312_v40 = vmul.f32 0.125, %v208_v27 }
 0x1d6   :  { %v214_v30 = vsel %vm213_vm6, %v212_v28, 0.0 }
 0x1d7   :  { %v215_v31 = vrot.slane %v214_v30, 4 }
 0x1d9   :  { %v216_v32 = vadd.f32 %v215_v31, %v214_v30 }
 0x1db   :  { %v217_v33 = vrot.slane %v216_v32, 2 }
 0x1dd   :  { %v218_v34 = vadd.f32 %v217_v33, %v216_v32 }
 0x1df   :  { %v219_v35 = vrot.slane %v218_v34, 1 }
 0x1e1   :  { %v220_v36 = vadd.f32 %v219_v35, %v218_v34 }
 0x1e3   :  { %v310_v37 = vsub.f32 %v220_v36, %v306_v25 }
 0x1e5   :  { %v311_v39 = vmul.f32 0.14285715, %v310_v37 }
 0x1e7   :  { %v316_v41 = vrot.slane %v311_v39, %v315_v38  ;;  %v344_v0 = vmul.f32 %v320_v43, %v311_v39 }
 0x1e9   :  { %v317_v42 = vsel %vm572_vm5, %v316_v41, %v312_v40  ;;  %v345_v4 = vadd.f32 %v344_v0, %v322_v45 }
 0x1ea   :  { %v321_v44 = vmul.f32 %v320_v43, %v317_v42 }
 0x1ec   :  { %v323_v46 = vadd.f32 %v322_v45, %v321_v44 }
 0x1ee   :  { %v324_v47 = vsel %vm213_vm6, %v323_v46, -inf }
 0x1ef   :  { %v325_v48 = vrot.slane %v324_v47, 4 }
 0x1f1   :  { %v326_v49 = vmax.f32 %v324_v47, %v325_v48 }
 0x1f3   :  { %v327_v50 = vrot.slane %v326_v49, 2 }
 0x1f5   :  { %v328_v51 = vmax.f32 %v326_v49, %v327_v50 }
 0x1f7   :  { %v329_v52 = vrot.slane %v328_v51, 1 }
 0x1f9   :  { %v330_v53 = vmax.f32 %v328_v51, %v329_v52 }
 0x1fb   :  { %v331_v54 = vsub.f32 %v323_v46, %v330_v53 }
 0x1fd   :  { %v332_v55 = vmul.f32 1.442695, %v331_v54 }
 0x1ff   :  { %469 = vpow2.f32 %v332_v55 }
 0x209   :  { %v470_v56 = vpop.eup %469 }
 0x20a   :  { %v334_v57 = vsel %vm213_vm6, %v470_v56, 0.0 }
 0x20b   :  { %v335_v58 = vrot.slane %v334_v57, 4 }
 0x20d   :  { %v336_v59 = vadd.f32 %v335_v58, %v334_v57 }
 0x20f   :  { %v337_v60 = vrot.slane %v336_v59, 2 }
 0x211   :  { %v338_v61 = vadd.f32 %v337_v60, %v336_v59 }
 0x213   :  { %v339_v62 = vrot.slane %v338_v61, 1 }
 0x215   :  { %v340_v63 = vadd.f32 %v339_v62, %v338_v61 }
 0x217   :  { %471 = vlog2.f32 %v340_v63 }
 0x221   :  { %v472_v1 = vpop.eup %471 }
 0x222   :  { %v342_v2 = vmul.f32 0.6931472, %v472_v1 }
 0x224   :  { %v343_v3 = vadd.f32 %v342_v2, %v330_v53 }
 0x226   :  { %v346_v5 = vsub.f32 %v343_v3, %v345_v4 }
 0x228   :  { %v348_v6 = vsel %vm347_vm7, %v346_v5, 0.0 }
 0x229   :  { %349 = vadd.xlane.f32.xlu0 %v348_v6 }
 0x2b6   :  { %v350_v7 = vpop.xlane.xlu0 %349 }
 0x2b7   :  { %v351_v8 = vrot.slane %v350_v7, 4 }
 0x2b9   :  { %v352_v9 = vadd.f32 %v351_v8, %v350_v7 }
 0x2bb   :  { %v353_v10 = vrot.slane %v352_v9, 2 }
 0x2bd   :  { %v354_v11 = vadd.f32 %v353_v10, %v352_v9 }
 0x2bf   :  { %v355_v12 = vrot.slane %v354_v11, 1 }
 0x2c1   :  { %v356_v13 = vadd.f32 %v355_v12, %v354_v11 }
 0x2c3   :  { %458 = vpush %v356_v13 }
 0x2f4   :  { %s459_s28 = spop %458 }
 0x2f5   :  { %s358_s29 = smul.f32 0.03125, %s459_s28 }
 0x2f7   :  { %360 = sst [smem:[#allocation7]] %s358_s29 }
 0x2f8   :  { %516 = shalt.err (!%p513_p1)
}
 0x2f9   :  { %s531_s9 = smov [#allocation7]  }
 0x2fa   :  { %368 = dma.smem_to_hbm %s531_s9, 16, %s615_s2, [#allocation4]  }
 0x2fb   :  { %521 = dma.done.wait [#allocation4], 16  }
 0x2fc   :  { %522 = vsyncadd [#allocation4], 4294967280 }
 0x2fd   :  { %372 = sfence }
 0x2fe   :  { %373 = vsyncpa [#allocation3], 1 }
 0x2ff   :  { %374 = vsyncpa [#allocation4], 1 }
 0x300   :  { %375 = vsyncpa [#allocation5], 1 }

</bundles_post_ra>
